<compile_context>
chip_gen: v5e
topology: v5e:2x2
jax: 0.10.0
libtpu: 0.0.40
codegen_flags: <defaults>
</compile_context>

<pallas_src>
import functools

import jax
import jax.numpy as jnp
from jax import lax
from jax.experimental import pallas as pl
from jax.experimental.pallas import tpu as pltpu

_MIB = 1024 * 1024
_TM_CAP = 512   # row-tile cap (multiple of 8); large tm cuts Y re-streaming
_TN_CAP = 512   # col-tile cap (multiple of 128); lane-dense output stores


def _round_up(v, m):
    return ((v + m - 1) // m) * m


def _vmem_budget():
    """(vmem_limit_bytes, tile working-set budget) for the local TPU generation."""
    try:
        cap = int(pltpu.get_tpu_info().vmem_capacity_bytes)
    except Exception:  # no TPU info available: assume the smallest (v7x per-TC)
        cap = 64 * _MIB
    limit = max(16 * _MIB, min(cap // 2, 48 * _MIB))
    return limit, int(limit * 0.85)


_VMEM_LIMIT, _TILE_BUDGET = _vmem_budget()


def _matmul_tiles(n, m, d, budget):
    """Pick (tm, tn) so the double-buffered working set fits the VMEM budget."""

    def ws(tm, tn):
        # double-buffered X [tm,D], Yt [D,tn], out [tm,tn] + tiny norm blocks (f32)
        return 4 * (2 * tm * d + 2 * d * tn + 2 * tm * tn + 2 * tm + 2 * tn)

    tm = n if n <= _TM_CAP else _TM_CAP
    tn = m if m <= _TN_CAP else _TN_CAP
    if ws(tm, tn) <= budget:
        return tm, tn
    # Need to shrink: use aligned tiles (partial edge blocks are masked on store).
    tm = min(_TM_CAP, _round_up(n, 8))
    tn = min(_TN_CAP, _round_up(m, 128))
    # Shrink tn first (Y total HBM traffic depends on cdiv(N, tm), not tn).
    while ws(tm, tn) > budget and tn > 128:
        tn = max(128, _round_up(tn // 2, 128))
    while ws(tm, tn) > budget and tm > 8:
        tm = max(8, _round_up(tm // 2, 8))
    # TODO(synk): for extreme D add a third "arbitrary" K-reduction grid axis
    # with a VMEM f32 accumulator instead of loading the full D per tile.
    return tm, tn


def _exp_tiles(n, m):
    """Large lane-dense tiles for the pure read+write exp pass (<=16 MiB WS)."""
    tr = n if n <= 512 else 512
    tc = m if m <= 2048 else 2048
    return tr, tc


# ---------------------------------------------------------------------------
# Kernels
# ---------------------------------------------------------------------------

def _cross_term(x_ref, yt_ref, bf16):
    x = x_ref[...]
    yt = yt_ref[...]
    if bf16:  # opt-in precision trade for the compute-bound large-D regime
        x = x.astype(jnp.bfloat16)
        yt = yt.astype(jnp.bfloat16)
    # Canonical [M,K] x [K,N] MXU contraction (Y pre-transposed in the wrapper,
    # so no per-tile transpose is needed inside the grid loop).
    return lax.dot_general(
        x, yt, dimension_numbers=(((1,), (0,)), ((), ())),
        preferred_element_type=jnp.float32)


def _rbf_fused_kernel(x_ref, yt_ref, xx_ref, yy_ref, out_ref, *, neg_gamma, bf16):
    """One (tm, tn) tile of exp(neg_gamma * (-2*X@Y.T + ||x||^2 + ||y||^2))."""
    xy = _cross_term(x_ref, yt_ref, bf16)
    out_ref[...] = jnp.exp(neg_gamma * (-2.0 * xy + xx_ref[...] + yy_ref[...]))


def _dnorm2_kernel(x_ref, yt_ref, xx_ref, yy_ref, out_ref, *, bf16):
    """One (tm, tn) tile of the squared pairwise distance matrix."""
    xy = _cross_term(x_ref, yt_ref, bf16)
    out_ref[...] = -2.0 * xy + xx_ref[...] + yy_ref[...]


def _exp_kernel(neg_gamma_ref, d_ref, out_ref):
    """exp(neg_gamma * dnorm2), applied tile-by-tile in place (aliased)."""
    out_ref[...] = jnp.exp(neg_gamma_ref[0] * d_ref[...])


# ---------------------------------------------------------------------------
# Exact lower median via streaming bisection (replaces the global sort)
# ---------------------------------------------------------------------------

def _lower_median(x):
    """Exact LOWER median of all elements (torch.median semantics on flatten).

    32-step binary search over the order-isomorphic uint32 key space; each
    step is a single streaming count over the matrix (mem-bound), instead of
    an O(NM log NM) global sort.
    """
    flat = x.reshape(-1)
    k = (flat.shape[0] - 1) // 2  # 0-indexed rank of the lower median
    bits = lax.bitcast_convert_type(flat, jnp.uint32)
    sign = jnp.uint32(0x80000000)
    keys = jnp.where(bits >= sign, ~bits, bits | sign)  # monotone f32 -> u32

    def body(_, lohi):
        lo, hi = lohi
        mid = lo + (hi - lo) // jnp.uint32(2)
        cnt = jnp.sum((keys <= mid).astype(jnp.int32))
        pred = cnt >= (k + 1)
        return (jnp.where(pred, lo, mid + jnp.uint32(1)),
                jnp.where(pred, mid, hi))

    lo, _ = lax.fori_loop(0, 32, body,
                          (jnp.uint32(0), jnp.uint32(0xFFFFFFFF)))
    b = jnp.where(lo >= sign, lo & jnp.uint32(0x7FFFFFFF), ~lo)
    return lax.bitcast_convert_type(b, jnp.float32)


# ---------------------------------------------------------------------------
# Glue
# ---------------------------------------------------------------------------

@functools.partial(jax.jit, static_argnames=("sigma", "bf16_matmul"))
def rbf_forward(x, y, sigma=None, bf16_matmul=False):
    x = x.astype(jnp.float32)
    y = y.astype(jnp.float32)
    n, d = x.shape
    m, _ = y.shape

    tm, tn = _matmul_tiles(n, m, d, _TILE_BUDGET)
    grid = (pl.cdiv(n, tm), pl.cdiv(m, tn))

    # One wrapper-side transpose -> canonical [D, M] RHS layout for the MXU.
    yt = y.T
    # Hoisted row norms (tiny O(N*D) work, done once outside the tile loop).
    xx = jnp.sum(x * x, axis=-1, keepdims=True)        # [N, 1]
    yy = jnp.sum(y * y, axis=-1, keepdims=True).T      # [1, M] lane-major

    x_spec = pl.BlockSpec((tm, d), lambda i, j: (i, 0))   # fetched once per i
    yt_spec = pl.BlockSpec((d, tn), lambda i, j: (0, j))  # full-extent col when m<=tn
    xx_spec = pl.BlockSpec((tm, 1), lambda i, j: (i, 0))
    yy_spec = pl.BlockSpec((1, tn), lambda i, j: (0, j))
    out_spec = pl.BlockSpec((tm, tn), lambda i, j: (i, j))
    cparams = pltpu.CompilerParams(
        dimension_semantics=("parallel", "parallel"),
        vmem_limit_bytes=_VMEM_LIMIT)

    if sigma is not None:
        # sigma is static: fuse the exp epilogue; dnorm2 never touches HBM.
        neg_gamma = -1.0 / (1e-08 + 2.0 * float(sigma) ** 2)
        return pl.pallas_call(
            functools.partial(_rbf_fused_kernel, neg_gamma=neg_gamma,
                              bf16=bf16_matmul),
            out_shape=jax.ShapeDtypeStruct((n, m), jnp.float32),
            grid=grid,
            in_specs=[x_spec, yt_spec, xx_spec, yy_spec],
            out_specs=out_spec,
            compiler_params=cparams,
        )(x, yt, xx, yy)

    # sigma is None: dnorm2 is needed for the global median, so materialize it
    # once (exact (n, m) shape, no padding / no post-slice).
    dnorm2 = pl.pallas_call(
        functools.partial(_dnorm2_kernel, bf16=bf16_matmul),
        out_shape=jax.ShapeDtypeStruct((n, m), jnp.float32),
        grid=grid,
        in_specs=[x_spec, yt_spec, xx_spec, yy_spec],
        out_specs=out_spec,
        compiler_params=cparams,
    )(x, yt, xx, yy)

    # Median is detached in the torch code; stop_gradient mirrors that.
    med = _lower_median(lax.stop_gradient(dnorm2))
    h = med / (2.0 * jnp.log(jnp.float32(n) + 1.0))
    sigma_v = jnp.sqrt(h) * 0.001          # NaN if med < 0 (same hazard as torch)
    neg_gamma = (-1.0 / (1e-08 + 2.0 * sigma_v ** 2)).astype(jnp.float32)
    neg_gamma_arr = jnp.reshape(neg_gamma, (1,))

    # Purely HBM-bound pass: bigger lane-dense tiles, exp applied in place
    # (output aliases the dnorm2 buffer; median was already consumed above).
    tr, tc = _exp_tiles(n, m)
    d_spec = pl.BlockSpec((tr, tc), lambda i, j: (i, j))
    return pl.pallas_call(
        _exp_kernel,
        out_shape=jax.ShapeDtypeStruct((n, m), jnp.float32),
        grid=(pl.cdiv(n, tr), pl.cdiv(m, tc)),
        in_specs=[
            pl.BlockSpec(memory_space=pltpu.MemorySpace.SMEM),  # -gamma scalar
            d_spec,                                             # dnorm2 tiles
        ],
        out_specs=d_spec,
        compiler_params=cparams,
        input_output_aliases={1: 0},
    )(neg_gamma_arr, dnorm2)


class RBF:
    """Thin wrapper mirroring the PyTorch module interface."""

    def __init__(self, n, sigma=None):
        self.n = n
        self.sigma = sigma

    def __call__(self, x, y):
        return rbf_forward(x, y, sigma=self.sigma)


if __name__ == "__main__":
    key = jax.random.PRNGKey(0)
    kx, ky = jax.random.split(key)
    # Small shapes: N = M = 8 samples, D = 32 features.
    X = jax.random.normal(kx, (8, 32), dtype=jnp.float32)
    Y = jax.random.normal(ky, (8, 32), dtype=jnp.float32)

    # sigma=None path: tiled dnorm2 kernel + bisection median + aliased exp.
    K_auto = RBF(n=X.shape[0], sigma=None)(X, Y)
    # Static-sigma path: single fully fused kernel.
    K_fixed = RBF(n=X.shape[0], sigma=1.0)(X, Y)
    jax.block_until_ready((K_auto, K_fixed))

    assert K_auto.shape == (8, 8) and K_fixed.shape == (8, 8)
    assert bool(jnp.all(jnp.isfinite(K_auto)))
    assert bool(jnp.all(jnp.isfinite(K_fixed)))
    print("KERNEL_OK")
</pallas_src>

<mosaic_0001>
module attributes {stable_mosaic.version = 11 : i64} {
  func.func @_dnorm2_kernel(%arg0: i32, %arg1: i32, %arg2: memref<8x32xf32, #tpu.memory_space<vmem>>, %arg3: memref<32x8xf32, #tpu.memory_space<vmem>>, %arg4: memref<8x1xf32, #tpu.memory_space<vmem>>, %arg5: memref<1x8xf32, #tpu.memory_space<vmem>>, %arg6: memref<8x8xf32, #tpu.memory_space<vmem>>) attributes {dimension_semantics = [#tpu.dimension_semantics<parallel>, #tpu.dimension_semantics<parallel>], iteration_bounds = array<i64: 1, 1>, scalar_prefetch = 0 : i64, scratch_operands = 0 : i64, tpu.core_type = #tpu.core_type<tc>, window_params = [{transform_indices = @transform_0, window_bounds = array<i64: 8, 32>}, {transform_indices = @transform_1, window_bounds = array<i64: 32, 8>}, {transform_indices = @transform_2, window_bounds = array<i64: 8, 1>}, {transform_indices = @transform_3, window_bounds = array<i64: 1, 8>}, {transform_indices = @transform_4, window_bounds = array<i64: 8, 8>}]} {
    %c0 = arith.constant 0 : index
    %c0_0 = arith.constant 0 : index
    %0 = vector.load %arg2[%c0, %c0_0] : memref<8x32xf32, #tpu.memory_space<vmem>>, vector<8x32xf32>
    %c0_1 = arith.constant 0 : index
    %c0_2 = arith.constant 0 : index
    %1 = vector.load %arg3[%c0_1, %c0_2] : memref<32x8xf32, #tpu.memory_space<vmem>>, vector<32x8xf32>
    %cst = arith.constant dense<0.000000e+00> : vector<8x8xf32>
    %2 = tpu.matmul %0, %1, %cst {dimension_numbers = #tpu.dot_dimension_numbers<[1], [0], [0], [1], [0, 0, 1, 1], [], []>} : vector<8x32xf32>, vector<32x8xf32>, vector<8x8xf32> -> vector<8x8xf32>
    %cst_3 = arith.constant -2.000000e+00 : f32
    %3 = vector.broadcast %cst_3 : f32 to vector<8x8xf32>
    %4 = arith.mulf %3, %2 : vector<8x8xf32>
    %c0_4 = arith.constant 0 : index
    %c0_5 = arith.constant 0 : index
    %5 = vector.load %arg4[%c0_4, %c0_5] : memref<8x1xf32, #tpu.memory_space<vmem>>, vector<8x1xf32>
    %6 = vector.broadcast %5 : vector<8x1xf32> to vector<8x8xf32>
    %7 = arith.addf %4, %6 : vector<8x8xf32>
    %c0_6 = arith.constant 0 : index
    %c0_7 = arith.constant 0 : index
    %8 = vector.load %arg5[%c0_6, %c0_7] : memref<1x8xf32, #tpu.memory_space<vmem>>, vector<1x8xf32>
    %9 = vector.broadcast %8 : vector<1x8xf32> to vector<8x8xf32>
    %10 = arith.addf %7, %9 : vector<8x8xf32>
    %c0_8 = arith.constant 0 : index
    %c0_9 = arith.constant 0 : index
    %11 = vector.load %arg6[%c0_8, %c0_9] : memref<8x8xf32, #tpu.memory_space<vmem>>, vector<8x8xf32>
    tpu.vector_store %arg6[%c0_8, %c0_9], %10 {strides = array<i32>} : memref<8x8xf32, #tpu.memory_space<vmem>>, vector<8x8xf32>,
    return
  }
  func.func @transform_0(%arg0: i32, %arg1: i32) -> (i32, i32) {
    %c0_i32 = arith.constant 0 : i32
    %c0_i32_0 = arith.constant 0 : i32
    return %arg0, %c0_i32 : i32, i32
  }
  func.func @transform_1(%arg0: i32, %arg1: i32) -> (i32, i32) {
    %c0_i32 = arith.constant 0 : i32
    %c0_i32_0 = arith.constant 0 : i32
    return %c0_i32, %arg1 : i32, i32
  }
  func.func @transform_2(%arg0: i32, %arg1: i32) -> (i32, i32) {
    %c0_i32 = arith.constant 0 : i32
    %c0_i32_0 = arith.constant 0 : i32
    return %arg0, %c0_i32 : i32, i32
  }
  func.func @transform_3(%arg0: i32, %arg1: i32) -> (i32, i32) {
    %c0_i32 = arith.constant 0 : i32
    %c0_i32_0 = arith.constant 0 : i32
    return %c0_i32, %arg1 : i32, i32
  }
  func.func @transform_4(%arg0: i32, %arg1: i32) -> (i32, i32) {
    %c0_i32 = arith.constant 0 : i32
    return %arg0, %arg1 : i32, i32
  }
}

module attributes {stable_mosaic.version = 11 : i64} {
  func.func @_exp_kernel(%arg0: i32, %arg1: i32, %arg2: memref<1xf32, #tpu.memory_space<smem>>, %arg3: memref<8x8xf32, #tpu.memory_space<vmem>>, %arg4: memref<8x8xf32, #tpu.memory_space<vmem>>) attributes {dimension_semantics = [#tpu.dimension_semantics<parallel>, #tpu.dimension_semantics<parallel>], iteration_bounds = array<i64: 1, 1>, scalar_prefetch = 0 : i64, scratch_operands = 0 : i64, tpu.core_type = #tpu.core_type<tc>, window_params = [{transform_indices = @transform_0, window_bounds = array<i64: 1>}, {transform_indices = @transform_1, window_bounds = array<i64: 8, 8>}, {transform_indices = @transform_2, window_bounds = array<i64: 8, 8>}]} {
    %c0 = arith.constant 0 : index
    %0 = memref.load %arg2[%c0] : memref<1xf32, #tpu.memory_space<smem>>
    %c0_0 = arith.constant 0 : index
    %c0_1 = arith.constant 0 : index
    %1 = vector.load %arg3[%c0_0, %c0_1] : memref<8x8xf32, #tpu.memory_space<vmem>>, vector<8x8xf32>
    %2 = vector.broadcast %0 : f32 to vector<8x8xf32>
    %3 = arith.mulf %2, %1 : vector<8x8xf32>
    %4 = math.exp %3 : vector<8x8xf32>
    %c0_2 = arith.constant 0 : index
    %c0_3 = arith.constant 0 : index
    %5 = vector.load %arg4[%c0_2, %c0_3] : memref<8x8xf32, #tpu.memory_space<vmem>>, vector<8x8xf32>
    tpu.vector_store %arg4[%c0_2, %c0_3], %4 {strides = array<i32>} : memref<8x8xf32, #tpu.memory_space<vmem>>, vector<8x8xf32>,
    return
  }
  func.func @transform_0(%arg0: i32, %arg1: i32) -> i32 {
    %c0_i32 = arith.constant 0 : i32
    %c0_i32_0 = arith.constant 0 : i32
    return %c0_i32 : i32
  }
  func.func @transform_1(%arg0: i32, %arg1: i32) -> (i32, i32) {
    %c0_i32 = arith.constant 0 : i32
    return %arg0, %arg1 : i32, i32
  }
  func.func @transform_2(%arg0: i32, %arg1: i32) -> (i32, i32) {
    %c0_i32 = arith.constant 0 : i32
    return %arg0, %arg1 : i32, i32
  }
}

</mosaic_0001>

<bundles_post_ra>
// kernel: rbf_forward.3
= control target key start
LH: loop header
LB: loop body
LE: loop exit
PB: predicated region body
PF: predicated region fallthrough
CT: control target
= control target key end

     0   :  { %8 = vsyncpa [#allocation4], 0  ;;  %s134_s0 = inlined_call_operand.<no memory space> [shape: f32[1], index: 0, kind: input, shape index: {}]   ;;  %s135_s1 = inlined_call_operand.hbm [shape: f32[8,8], index: 1, kind: input, shape index: {}, may-alias: {1,2}]   ;;  %s136_s2 = inlined_call_operand.hbm [shape: f32[8,8], index: 2, kind: output, shape index: {}, may-alias: {1,2}]  }
   0x1   :  { %9 = vsyncpa [#allocation5], 0  ;;  %s17_s11 = sshll.u32 %s135_s1, 4  ;;  %s108_s12 = smov [#allocation3]   ;;  %s18_s11 = int_to_ptr.hbm [resolvable:$true] %s17_s11 }
   0x2   :  { %s19_s13 = sshll.u32 %s108_s12, 4  ;;  %s20_s13 = int_to_ptr.vmem [resolvable:$true] %s19_s13 }
   0x3   :  { %22 = dma.hbm_to_vmem [thread:$0]  %s18_s11, 128, %s20_s13, [#allocation4]  }
   0x4   :  { %104 = dma.done.wait [#allocation4], 128  }
   0x5   :  { %105 = vsyncadd [#allocation4], 4294967168  ;;  %v29_v0 = vstv %s134_s0  ;;  %v28_v1 = vld [vmem:[#allocation3] sm:$0xff]  ;;  %s109_s16 = smov [#allocation6]   ;;  %s42_s1 = sshll.u32 %s136_s2, 4  ;;  %vm33_vm0 = vcmask 64512   ;;  %s43_s1 = int_to_ptr.hbm [resolvable:$true] %s42_s1 }
   0x6   :  { %v30_v2 = vmul.f32 %v29_v0, %v28_v1  ;;  %s40_s17 = sshll.u32 %s109_s16, 4  ;;  %s41_s17 = int_to_ptr.vmem [resolvable:$true] %s40_s17 }
   0x8   :  { %v31_v3 = vmul.f32 1.442695, %v30_v2 }
   0xa   :  { %54 = vpow2.f32 %v31_v3 }
  0x10   :  { %v55_v4 = vpop.eup %54 }
  0x11   :  { %34 = vst.msk [vmem:[#allocation6] sm:$0xff] %vm33_vm0, %v55_v4 }
  0x12   :  { %45 = dma.vmem_to_hbm [thread:$0]  %s41_s17, 128, %s43_s1, [#allocation5]  }
  0x13   :  { %106 = dma.done.wait [#allocation5], 128  }
  0x14   :  { %107 = vsyncadd [#allocation5], 4294967168 }
  0x15   :  { %50 = vsyncpa [#allocation4], 1 }
  0x16   :  { %51 = vsyncpa [#allocation5], 1 }

// kernel: rbf_forward.2
= control target key start
LH: loop header
LB: loop body
LE: loop exit
PB: predicated region body
PF: predicated region fallthrough
CT: control target
= control target key end

     0   :  { %v69_v2 = vmov 0   ;;  %vm22_vm0 = vcmask 261120   ;;  %vm59_vm1 = vcmask 64512   ;;  %s119_s1 = inlined_call_operand.vmem [shape: f32[32,8], index: 1, kind: input, shape index: {}]   ;;  %s120_s2 = inlined_call_operand.vmem [shape: f32[8,1], index: 2, kind: input, shape index: {}]   ;;  %s121_s0 = inlined_call_operand.vmem [shape: f32[8,32], index: 0, kind: input, shape index: {}]   ;;  %s122_s3 = inlined_call_operand.vmem [shape: f32[1,8], index: 3, kind: input, shape index: {}]   ;;  %s123_s4 = inlined_call_operand.vmem [shape: f32[8,8], index: 4, kind: output, shape index: {}]  }
   0x1   :  { %v21_v0 = vld [vmem:[%s119_s1 + $0x18] sm:$0xff]  ;;  %v20_v1 = vld [vmem:[%s119_s1 + $0x10] sm:$0xff]  ;;  %67 = vset.pattern.permute.xlu0 %v69_v2  ;;  %v47_v3 = vld [vmem:[%s120_s2] sm:$0xff] }
   0x2   :  { %38 = vmatpush.msra.mxu0 %v21_v0  ;;  %v19_v4 = vld [vmem:[%s119_s1 + $0x8] sm:$0xff]  ;;  %50 = vperm.xlu0 %67, %v47_v3   ;;  %v18_v5 = vld [vmem:[%s119_s1] sm:$0xff] }
   0x3   :  { %v17_v6 = vld [vmem:[%s121_s0] sm:$0xff] }
   0x4   :  { %39 = vmatpush.msra.mxu0 %v20_v1  ;;  %v68_v10 = vld [vmem:[%s122_s3] ss:$0 sm:$0xff] }
   0x6   :  { %40 = vmatpush.msra.mxu0 %v19_v4 }
   0x8   :  { %41 = vmatpush.msra.mxu0 %v18_v5 }
   0x9   :  { %65 = vmatmul.msk.f32.vlgmr.msra.gmra.mxu0 %vm22_vm0, %v17_v6 }
  0x74   :  { %v51_v8 = vpop.permute.xlu0 %50 }
  0x86   :  { %v43_v7 = vpop.f32.mrf.mxu0 }
  0x87   :  { %v46_v9 = vmul.f32 -2.0, %v43_v7 }
  0x89   :  { %v53_v11 = vadd.f32 %v51_v8, %v46_v9 }
  0x8b   :  { %v58_v12 = vadd.f32 %v68_v10, %v53_v11 }
  0x8d   :  { %60 = vst.msk [vmem:[%s123_s4] sm:$0xff] %vm59_vm1, %v58_v12 }

</bundles_post_ra>
